<compile_context>
chip_gen: v6e
topology: v6e:2x2x1
jax: 0.10.0
libtpu: 0.0.40
codegen_flags: <defaults>
</compile_context>

<pallas_src>
import functools

import jax
import jax.numpy as jnp
from jax.experimental import pallas as pl
from jax.experimental.pallas import tpu as pltpu

CLAMP = 2.0           # self.clamp
ACT_NORM_INIT = 10.0  # SOFTPLUS type: act_norm = 10.0 * 1.0


def _round_up(n, m):
    return ((n + m - 1) // m) * m


def _vmem_budget_bytes():
    """Generation-aware VMEM budget: ~3/4 of physical, clamped to [32, 96] MiB."""
    try:
        cap = int(pltpu.get_tpu_info().vmem_capacity_bytes)
    except Exception:
        cap = 64 * 1024 * 1024   # conservative (v7x per-core VMEM)
    return max(32 * 1024 * 1024, min((cap * 3) // 4, 96 * 1024 * 1024))


def _pick_tile(B, block_rows, min_tiles=4, min_tile_rows=64):
    """Batch tile (multiple of 8): prefers dividing B exactly (no pad/slice),
    >= min_tiles grid steps when B is large enough, as big as possible."""
    block_rows = max(8, (block_rows // 8) * 8)
    tb = min(block_rows, _round_up(B, 8))
    if (_round_up(B, tb) // tb) < min_tiles and B >= min_tiles * min_tile_rows:
        tb = _round_up((B + min_tiles - 1) // min_tiles, 8)
    # Prefer a nearby tile size that divides B exactly (avoids pad + slices).
    for cand in range(tb, max(7, tb // 2), -8):
        if B % cand == 0:
            return cand
    return tb


def _block_kernel(*refs, fused_w2, split2):
    if fused_w2:
        (x1_ref, x2_ref, w1_ref, b1_ref, w2_ref, b2_ref,
         wp1_ref, wp2_ref, offw_ref, lsum_ref, out_ref, jac_ref) = refs
    else:
        (x1_ref, x2_ref, w1_ref, b1_ref,
         w2s_ref, b2s_ref, w2t_ref, b2t_ref,
         wp1_ref, wp2_ref, offw_ref, lsum_ref, out_ref, jac_ref) = refs

    x1 = x1_ref[...]                                   # (TB, split1)
    x2 = x2_ref[...]                                   # (TB, split2)

    # --- subnet s(x1): Linear -> ReLU -> Linear (0.1 pre-scale folded in) ---
    h = jnp.maximum(
        jnp.dot(x1, w1_ref[...], preferred_element_type=jnp.float32) + b1_ref[...],
        0.0)
    if fused_w2:
        # single MXU dispatch; lane slice at a 128-aligned boundary is free.
        a = jnp.dot(h, w2_ref[...], preferred_element_type=jnp.float32) + b2_ref[...]
        a_s = a[:, :split2]
        a_t = a[:, split2:]
    else:
        a_s = jnp.dot(h, w2s_ref[...], preferred_element_type=jnp.float32) + b2s_ref[...]
        a_t = jnp.dot(h, w2t_ref[...], preferred_element_type=jnp.float32) + b2t_ref[...]

    # --- affine coupling (forward / rev=False) ---
    sub_jac = CLAMP * jnp.tanh(a_s)                    # log_e(s)
    x2_new = x2 * jnp.exp(sub_jac) + a_t
    # jac = sum_j log_e(s)_j + sum(log(scale + eps))   (lsum precomputed)
    jac_ref[...] = jnp.sum(sub_jac, axis=1, keepdims=True) + lsum_ref[...]

    # --- actnorm + permutation, folded into two resident matmuls ---
    # x_out = (x1 * scale1) @ W[:s1] + (x2_new * scale2) @ W[s1:] + off @ W
    out = jnp.dot(x1, wp1_ref[...], preferred_element_type=jnp.float32)
    out = out + jnp.dot(x2_new, wp2_ref[...], preferred_element_type=jnp.float32)
    out_ref[...] = out + offw_ref[...]


def block_forward(x, params, *, split1, split2, block_rows=512, interpret=False):
    """Pallas forward of Block (rev=False, unconditional).

    Returns (x_out, last_jac) matching the PyTorch module's [x_out] output and
    its self.last_jac side effect.
    """
    B, C = x.shape
    assert split1 + split2 == C
    hidden = params["w1"].shape[1]
    f32 = jnp.float32

    # ---- parameter-only preprocessing (done once, outside the kernel) ----
    w1 = params["w1"].astype(f32)                              # (split1, H)
    b1 = params["b1"].astype(f32)                              # (1, H)
    w2 = 0.1 * params["w2"].astype(f32)                        # 0.1 pre-scale folded
    b2 = 0.1 * params["b2"].astype(f32)

    # actnorm scale: 0.1 * softplus(a, beta=0.5), numerically stable form.
    scale = 0.1 * 2.0 * jax.nn.softplus(0.5 * params["act_norm"].astype(f32))  # (1, C)
    lsum = jnp.sum(jnp.log(scale + 1e-12)).reshape(1, 1)

    # permutation matrix with the actnorm fold: exact for hard OR soft w.
    w = params["w"].astype(f32)                                # (C, C)
    wp1 = scale[0, :split1][:, None] * w[:split1, :]           # (split1, C)
    wp2 = scale[0, split1:][:, None] * w[split1:, :]           # (split2, C)
    offw = params["act_offset"].astype(f32) @ w                # (1, C)

    fused_w2 = (split2 % 128 == 0) and (2 * split2 >= 256)
    if fused_w2:
        second = (w2, b2)
    else:
        second = (w2[:, :split2], b2[:, :split2], w2[:, split2:], b2[:, split2:])

    # ---- batch tiling ----
    tb = _pick_tile(B, block_rows)
    b_pad = _round_up(B, tb)
    if b_pad != B:
        x = jnp.pad(x, ((0, b_pad - B), (0, 0)))
    x1 = x[:, :split1].astype(f32)
    x2 = x[:, split1:].astype(f32)

    grid = (b_pad // tb,)

    def batch_spec(d):
        return pl.BlockSpec((tb, d), lambda i: (i, 0))

    def const_spec(arr):
        # Resident parameters: constant index_map + single buffer (halves the
        # parameter VMEM footprint; no pipelining needed for constants).
        r, c = arr.shape
        return pl.BlockSpec((r, c), lambda i: (0, 0), pipeline_mode=pl.Buffered(1))

    const_inputs = (w1, b1) + second + (wp1, wp2, offw, lsum)

    kernel = functools.partial(_block_kernel, fused_w2=fused_w2, split2=split2)

    x_out, jac = pl.pallas_call(
        kernel,
        out_shape=(
            jax.ShapeDtypeStruct((b_pad, C), jnp.float32),
            jax.ShapeDtypeStruct((b_pad, 1), jnp.float32),
        ),
        grid=grid,
        in_specs=[batch_spec(split1), batch_spec(split2)]
                + [const_spec(a) for a in const_inputs],
        out_specs=(
            batch_spec(C),
            pl.BlockSpec((tb, 1), lambda i: (i, 0)),
        ),
        compiler_params=pltpu.CompilerParams(
            dimension_semantics=("parallel",),          # shards batch tiles across TCs
            vmem_limit_bytes=_vmem_budget_bytes(),      # generation-aware budget
        ),
        interpret=interpret,
    )(x1, x2, *const_inputs)

    if b_pad != B:
        x_out = x_out[:B]
        jac = jac[:B]
    return x_out, jac[:, 0]


def make_params(key, channels, hidden):
    split1 = channels - channels // 2
    split2 = channels // 2
    k1, k2, k3, k4, kp = jax.random.split(key, 5)
    params = {
        # subnet MLP: split1 -> hidden -> 2*split2
        "w1": 0.1 * jax.random.normal(k1, (split1, hidden), jnp.float32),
        "b1": 0.1 * jax.random.normal(k2, (1, hidden), jnp.float32),
        "w2": 0.1 * jax.random.normal(k3, (hidden, 2 * split2), jnp.float32),
        "b2": 0.1 * jax.random.normal(k4, (1, 2 * split2), jnp.float32),
        # actnorm params (SOFTPLUS init)
        "act_norm": jnp.full((1, channels), ACT_NORM_INIT, jnp.float32),
        "act_offset": jnp.zeros((1, channels), jnp.float32),
        # hard permutation matrix (permute_soft=False): w[i, perm[i]] = 1
        # (the kernel's matmul path also handles a soft/orthogonal w exactly)
        "w": jax.nn.one_hot(jax.random.permutation(kp, channels), channels,
                            dtype=jnp.float32),
    }
    return params, split1, split2


def block_forward_ref(x, params, *, split1, split2):
    """Pure-JAX reference mirroring the PyTorch forward (rev=False)."""
    x1, x2 = x[:, :split1], x[:, split1:]
    h = jnp.maximum(x1 @ params["w1"] + params["b1"], 0.0)
    a1 = h @ params["w2"] + params["b2"]
    sub_jac = CLAMP * jnp.tanh(0.1 * a1[:, :split2])
    x2n = x2 * jnp.exp(sub_jac) + 0.1 * a1[:, split2:]
    j2 = jnp.sum(sub_jac, axis=1)
    scale = 0.1 * 2.0 * jax.nn.softplus(0.5 * params["act_norm"])
    jac = j2 + jnp.sum(jnp.log(scale + 1e-12))
    xcat = jnp.concatenate([x1, x2n], axis=1)
    x_out = (xcat * scale + params["act_offset"]) @ params["w"]
    return x_out, jac


if __name__ == "__main__":
    key = jax.random.PRNGKey(0)
    kx, kp = jax.random.split(key)

    B, C, H = 64, 16, 32   # batch, channels, subnet hidden size (small demo)
    params, split1, split2 = make_params(kp, C, H)
    x = jax.random.normal(kx, (B, C), jnp.float32)

    fwd = jax.jit(functools.partial(block_forward, split1=split1, split2=split2))
    x_out, jac = fwd(x, params)
    jax.block_until_ready(x_out)
    jax.block_until_ready(jac)

    x_ref, jac_ref = block_forward_ref(x, params, split1=split1, split2=split2)
    assert jnp.allclose(x_out, x_ref, atol=1e-5, rtol=1e-5)
    assert jnp.allclose(jac, jac_ref, atol=1e-5, rtol=1e-5)

    print("KERNEL_OK")
</pallas_src>

<mosaic_0001>
module attributes {stable_mosaic.version = 11 : i64} {
  func.func @_block_kernel(%arg0: i32, %arg1: memref<64x8xf32, #tpu.memory_space<vmem>>, %arg2: memref<64x8xf32, #tpu.memory_space<vmem>>, %arg3: memref<8x32xf32, #tpu.memory_space<vmem>>, %arg4: memref<1x32xf32, #tpu.memory_space<vmem>>, %arg5: memref<32x8xf32, #tpu.memory_space<vmem>>, %arg6: memref<1x8xf32, #tpu.memory_space<vmem>>, %arg7: memref<32x8xf32, #tpu.memory_space<vmem>>, %arg8: memref<1x8xf32, #tpu.memory_space<vmem>>, %arg9: memref<8x16xf32, #tpu.memory_space<vmem>>, %arg10: memref<8x16xf32, #tpu.memory_space<vmem>>, %arg11: memref<1x16xf32, #tpu.memory_space<vmem>>, %arg12: memref<1x1xf32, #tpu.memory_space<vmem>>, %arg13: memref<64x16xf32, #tpu.memory_space<vmem>>, %arg14: memref<64x1xf32, #tpu.memory_space<vmem>>) attributes {dimension_semantics = [#tpu.dimension_semantics<parallel>], iteration_bounds = array<i64: 1>, scalar_prefetch = 0 : i64, scratch_operands = 0 : i64, tpu.core_type = #tpu.core_type<tc>, window_params = [{transform_indices = @transform_0, window_bounds = array<i64: 64, 8>}, {transform_indices = @transform_1, window_bounds = array<i64: 64, 8>}, {pipeline_mode = #tpu.pipeline_mode<synchronous>, transform_indices = @transform_2, window_bounds = array<i64: 8, 32>}, {pipeline_mode = #tpu.pipeline_mode<synchronous>, transform_indices = @transform_3, window_bounds = array<i64: 1, 32>}, {pipeline_mode = #tpu.pipeline_mode<synchronous>, transform_indices = @transform_4, window_bounds = array<i64: 32, 8>}, {pipeline_mode = #tpu.pipeline_mode<synchronous>, transform_indices = @transform_5, window_bounds = array<i64: 1, 8>}, {pipeline_mode = #tpu.pipeline_mode<synchronous>, transform_indices = @transform_6, window_bounds = array<i64: 32, 8>}, {pipeline_mode = #tpu.pipeline_mode<synchronous>, transform_indices = @transform_7, window_bounds = array<i64: 1, 8>}, {pipeline_mode = #tpu.pipeline_mode<synchronous>, transform_indices = @transform_8, window_bounds = array<i64: 8, 16>}, {pipeline_mode = #tpu.pipeline_mode<synchronous>, transform_indices = @transform_9, window_bounds = array<i64: 8, 16>}, {pipeline_mode = #tpu.pipeline_mode<synchronous>, transform_indices = @transform_10, window_bounds = array<i64: 1, 16>}, {pipeline_mode = #tpu.pipeline_mode<synchronous>, transform_indices = @transform_11, window_bounds = array<i64: 1, 1>}, {transform_indices = @transform_12, window_bounds = array<i64: 64, 16>}, {transform_indices = @transform_13, window_bounds = array<i64: 64, 1>}]} {
    %c0 = arith.constant 0 : index
    %c0_0 = arith.constant 0 : index
    %0 = vector.load %arg1[%c0, %c0_0] : memref<64x8xf32, #tpu.memory_space<vmem>>, vector<64x8xf32>
    %c0_1 = arith.constant 0 : index
    %c0_2 = arith.constant 0 : index
    %1 = vector.load %arg2[%c0_1, %c0_2] : memref<64x8xf32, #tpu.memory_space<vmem>>, vector<64x8xf32>
    %c0_3 = arith.constant 0 : index
    %c0_4 = arith.constant 0 : index
    %2 = vector.load %arg3[%c0_3, %c0_4] : memref<8x32xf32, #tpu.memory_space<vmem>>, vector<8x32xf32>
    %cst = arith.constant dense<0.000000e+00> : vector<64x32xf32>
    %3 = tpu.matmul %0, %2, %cst {dimension_numbers = #tpu.dot_dimension_numbers<[1], [0], [0], [1], [0, 0, 1, 1], [], []>} : vector<64x8xf32>, vector<8x32xf32>, vector<64x32xf32> -> vector<64x32xf32>
    %c0_5 = arith.constant 0 : index
    %c0_6 = arith.constant 0 : index
    %4 = vector.load %arg4[%c0_5, %c0_6] : memref<1x32xf32, #tpu.memory_space<vmem>>, vector<1x32xf32>
    %5 = vector.broadcast %4 : vector<1x32xf32> to vector<64x32xf32>
    %6 = arith.addf %3, %5 : vector<64x32xf32>
    %cst_7 = arith.constant 0.000000e+00 : f32
    %7 = vector.broadcast %cst_7 : f32 to vector<64x32xf32>
    %8 = arith.maximumf %6, %7 : vector<64x32xf32>
    %c0_8 = arith.constant 0 : index
    %c0_9 = arith.constant 0 : index
    %9 = vector.load %arg5[%c0_8, %c0_9] : memref<32x8xf32, #tpu.memory_space<vmem>>, vector<32x8xf32>
    %cst_10 = arith.constant dense<0.000000e+00> : vector<64x8xf32>
    %10 = tpu.matmul %8, %9, %cst_10 {dimension_numbers = #tpu.dot_dimension_numbers<[1], [0], [0], [1], [0, 0, 1, 1], [], []>} : vector<64x32xf32>, vector<32x8xf32>, vector<64x8xf32> -> vector<64x8xf32>
    %c0_11 = arith.constant 0 : index
    %c0_12 = arith.constant 0 : index
    %11 = vector.load %arg6[%c0_11, %c0_12] : memref<1x8xf32, #tpu.memory_space<vmem>>, vector<1x8xf32>
    %12 = vector.broadcast %11 : vector<1x8xf32> to vector<64x8xf32>
    %13 = arith.addf %10, %12 : vector<64x8xf32>
    %c0_13 = arith.constant 0 : index
    %c0_14 = arith.constant 0 : index
    %14 = vector.load %arg7[%c0_13, %c0_14] : memref<32x8xf32, #tpu.memory_space<vmem>>, vector<32x8xf32>
    %cst_15 = arith.constant dense<0.000000e+00> : vector<64x8xf32>
    %15 = tpu.matmul %8, %14, %cst_15 {dimension_numbers = #tpu.dot_dimension_numbers<[1], [0], [0], [1], [0, 0, 1, 1], [], []>} : vector<64x32xf32>, vector<32x8xf32>, vector<64x8xf32> -> vector<64x8xf32>
    %c0_16 = arith.constant 0 : index
    %c0_17 = arith.constant 0 : index
    %16 = vector.load %arg8[%c0_16, %c0_17] : memref<1x8xf32, #tpu.memory_space<vmem>>, vector<1x8xf32>
    %17 = vector.broadcast %16 : vector<1x8xf32> to vector<64x8xf32>
    %18 = arith.addf %15, %17 : vector<64x8xf32>
    %19 = math.tanh %13 : vector<64x8xf32>
    %cst_18 = arith.constant 2.000000e+00 : f32
    %20 = vector.broadcast %cst_18 : f32 to vector<64x8xf32>
    %21 = arith.mulf %20, %19 : vector<64x8xf32>
    %22 = math.exp %21 : vector<64x8xf32>
    %23 = arith.mulf %1, %22 : vector<64x8xf32>
    %24 = arith.addf %23, %18 : vector<64x8xf32>
    %cst_19 = arith.constant dense<0.000000e+00> : vector<64xf32>
    %25 = vector.multi_reduction <add>, %21, %cst_19 [1] : vector<64x8xf32> to vector<64xf32>
    %26 = vector.shape_cast %25 : vector<64xf32> to vector<64x1xf32>
    %c0_20 = arith.constant 0 : index
    %c0_21 = arith.constant 0 : index
    %27 = vector.load %arg12[%c0_20, %c0_21] : memref<1x1xf32, #tpu.memory_space<vmem>>, vector<1x1xf32>
    %28 = vector.broadcast %27 : vector<1x1xf32> to vector<64x1xf32>
    %29 = arith.addf %26, %28 : vector<64x1xf32>
    %c0_22 = arith.constant 0 : index
    %c0_23 = arith.constant 0 : index
    %30 = vector.load %arg14[%c0_22, %c0_23] : memref<64x1xf32, #tpu.memory_space<vmem>>, vector<64x1xf32>
    tpu.vector_store %arg14[%c0_22, %c0_23], %29 {strides = array<i32>} : memref<64x1xf32, #tpu.memory_space<vmem>>, vector<64x1xf32>,
    %c0_24 = arith.constant 0 : index
    %c0_25 = arith.constant 0 : index
    %31 = vector.load %arg9[%c0_24, %c0_25] : memref<8x16xf32, #tpu.memory_space<vmem>>, vector<8x16xf32>
    %cst_26 = arith.constant dense<0.000000e+00> : vector<64x16xf32>
    %32 = tpu.matmul %0, %31, %cst_26 {dimension_numbers = #tpu.dot_dimension_numbers<[1], [0], [0], [1], [0, 0, 1, 1], [], []>} : vector<64x8xf32>, vector<8x16xf32>, vector<64x16xf32> -> vector<64x16xf32>
    %c0_27 = arith.constant 0 : index
    %c0_28 = arith.constant 0 : index
    %33 = vector.load %arg10[%c0_27, %c0_28] : memref<8x16xf32, #tpu.memory_space<vmem>>, vector<8x16xf32>
    %cst_29 = arith.constant dense<0.000000e+00> : vector<64x16xf32>
    %34 = tpu.matmul %24, %33, %cst_29 {dimension_numbers = #tpu.dot_dimension_numbers<[1], [0], [0], [1], [0, 0, 1, 1], [], []>} : vector<64x8xf32>, vector<8x16xf32>, vector<64x16xf32> -> vector<64x16xf32>
    %35 = arith.addf %32, %34 : vector<64x16xf32>
    %c0_30 = arith.constant 0 : index
    %c0_31 = arith.constant 0 : index
    %36 = vector.load %arg11[%c0_30, %c0_31] : memref<1x16xf32, #tpu.memory_space<vmem>>, vector<1x16xf32>
    %37 = vector.broadcast %36 : vector<1x16xf32> to vector<64x16xf32>
    %38 = arith.addf %35, %37 : vector<64x16xf32>
    %c0_32 = arith.constant 0 : index
    %c0_33 = arith.constant 0 : index
    %39 = vector.load %arg13[%c0_32, %c0_33] : memref<64x16xf32, #tpu.memory_space<vmem>>, vector<64x16xf32>
    tpu.vector_store %arg13[%c0_32, %c0_33], %38 {strides = array<i32>} : memref<64x16xf32, #tpu.memory_space<vmem>>, vector<64x16xf32>,
    return
  }
  func.func @transform_0(%arg0: i32) -> (i32, i32) {
    %c0_i32 = arith.constant 0 : i32
    %c0_i32_0 = arith.constant 0 : i32
    return %arg0, %c0_i32 : i32, i32
  }
  func.func @transform_1(%arg0: i32) -> (i32, i32) {
    %c0_i32 = arith.constant 0 : i32
    %c0_i32_0 = arith.constant 0 : i32
    return %arg0, %c0_i32 : i32, i32
  }
  func.func @transform_2(%arg0: i32) -> (i32, i32) {
    %c0_i32 = arith.constant 0 : i32
    %c0_i32_0 = arith.constant 0 : i32
    %c0_i32_1 = arith.constant 0 : i32
    return %c0_i32, %c0_i32_0 : i32, i32
  }
  func.func @transform_3(%arg0: i32) -> (i32, i32) {
    %c0_i32 = arith.constant 0 : i32
    %c0_i32_0 = arith.constant 0 : i32
    %c0_i32_1 = arith.constant 0 : i32
    return %c0_i32, %c0_i32_0 : i32, i32
  }
  func.func @transform_4(%arg0: i32) -> (i32, i32) {
    %c0_i32 = arith.constant 0 : i32
    %c0_i32_0 = arith.constant 0 : i32
    %c0_i32_1 = arith.constant 0 : i32
    return %c0_i32, %c0_i32_0 : i32, i32
  }
  func.func @transform_5(%arg0: i32) -> (i32, i32) {
    %c0_i32 = arith.constant 0 : i32
    %c0_i32_0 = arith.constant 0 : i32
    %c0_i32_1 = arith.constant 0 : i32
    return %c0_i32, %c0_i32_0 : i32, i32
  }
  func.func @transform_6(%arg0: i32) -> (i32, i32) {
    %c0_i32 = arith.constant 0 : i32
    %c0_i32_0 = arith.constant 0 : i32
    %c0_i32_1 = arith.constant 0 : i32
    return %c0_i32, %c0_i32_0 : i32, i32
  }
  func.func @transform_7(%arg0: i32) -> (i32, i32) {
    %c0_i32 = arith.constant 0 : i32
    %c0_i32_0 = arith.constant 0 : i32
    %c0_i32_1 = arith.constant 0 : i32
    return %c0_i32, %c0_i32_0 : i32, i32
  }
  func.func @transform_8(%arg0: i32) -> (i32, i32) {
    %c0_i32 = arith.constant 0 : i32
    %c0_i32_0 = arith.constant 0 : i32
    %c0_i32_1 = arith.constant 0 : i32
    return %c0_i32, %c0_i32_0 : i32, i32
  }
  func.func @transform_9(%arg0: i32) -> (i32, i32) {
    %c0_i32 = arith.constant 0 : i32
    %c0_i32_0 = arith.constant 0 : i32
    %c0_i32_1 = arith.constant 0 : i32
    return %c0_i32, %c0_i32_0 : i32, i32
  }
  func.func @transform_10(%arg0: i32) -> (i32, i32) {
    %c0_i32 = arith.constant 0 : i32
    %c0_i32_0 = arith.constant 0 : i32
    %c0_i32_1 = arith.constant 0 : i32
    return %c0_i32, %c0_i32_0 : i32, i32
  }
  func.func @transform_11(%arg0: i32) -> (i32, i32) {
    %c0_i32 = arith.constant 0 : i32
    %c0_i32_0 = arith.constant 0 : i32
    %c0_i32_1 = arith.constant 0 : i32
    return %c0_i32, %c0_i32_0 : i32, i32
  }
  func.func @transform_12(%arg0: i32) -> (i32, i32) {
    %c0_i32 = arith.constant 0 : i32
    %c0_i32_0 = arith.constant 0 : i32
    return %arg0, %c0_i32 : i32, i32
  }
  func.func @transform_13(%arg0: i32) -> (i32, i32) {
    %c0_i32 = arith.constant 0 : i32
    %c0_i32_0 = arith.constant 0 : i32
    return %arg0, %c0_i32 : i32, i32
  }
}

</mosaic_0001>

<bundles_post_ra>
// kernel: block_forward.1
= control target key start
LH: loop header
LB: loop body
LE: loop exit
PB: predicated region body
PF: predicated region fallthrough
CT: control target
= control target key end

     0   :  { %vm69_vm0 = vcmask 64512   ;;  %vm218_vm1 = vcmask 261120   ;;  %vm551_vm2 = vcmask 7168   ;;  %vm811_vm3 = vcmask 130048   ;;  %s1350_s2 = inlined_call_operand.vmem [shape: f32[8,32], index: 2, kind: input, shape index: {}]   ;;  %s1351_s0 = inlined_call_operand.vmem [shape: f32[64,8], index: 0, kind: input, shape index: {}]   ;;  %s1352_s4 = inlined_call_operand.vmem [shape: f32[32,8], index: 4, kind: input, shape index: {}]   ;;  %s1353_s6 = inlined_call_operand.vmem [shape: f32[32,8], index: 6, kind: input, shape index: {}]   ;;  %s1354_s3 = inlined_call_operand.vmem [shape: f32[1,32], index: 3, kind: input, shape index: {}]   ;;  %s1355_s8 = inlined_call_operand.vmem [shape: f32[8,16], index: 8, kind: input, shape index: {}]   ;;  %s1356_s9 = inlined_call_operand.vmem [shape: f32[8,16], index: 9, kind: input, shape index: {}]   ;;  %s1357_s11 = inlined_call_operand.<no memory space> [shape: f32[1,1], index: 11, kind: input, shape index: {}]   ;;  %s1358_s5 = inlined_call_operand.vmem [shape: f32[1,8], index: 5, kind: input, shape index: {}]   ;;  %s1359_s1 = inlined_call_operand.vmem [shape: f32[64,8], index: 1, kind: input, shape index: {}]   ;;  %s1360_s7 = inlined_call_operand.vmem [shape: f32[1,8], index: 7, kind: input, shape index: {}]   ;;  %s1361_s13 = inlined_call_operand.vmem [shape: f32[64,1], index: 13, kind: output, shape index: {1}]   ;;  %s1362_s10 = inlined_call_operand.vmem [shape: f32[1,16], index: 10, kind: input, shape index: {}]   ;;  %s1363_s12 = inlined_call_operand.vmem [shape: f32[64,16], index: 12, kind: output, shape index: {0}]  }
   0x1   :  { %v61_v0 = vld [vmem:[%s1350_s2] sm:$0xff]  ;;  %v1121_v2 = vld [vmem:[%s1351_s0 + $0x8] sm:$0xff]  ;;  %v1128_v3 = vld [vmem:[%s1351_s0 + $0x10] sm:$0xff]  ;;  %v19_v44 = vstv %s1357_s11 }
   0x2   :  { %v1116_v1 = vld [vmem:[%s1351_s0] sm:$0xff]  ;;  %924 = vmatprep.subr.mxu0 %v61_v0  ;;  %1006 = vmatprep.subr.mxu1 %v61_v0  ;;  %v1138_v5 = vld [vmem:[%s1351_s0 + $0x28] sm:$0xff]  ;;  %v1145_v6 = vld [vmem:[%s1351_s0 + $0x30] sm:$0xff]  ;;  %20 = vst [vmem:[#allocation2] sm:$0x1] %v19_v44 }
   0x3   :  { %926 = vmatprep.mubr.msk.f32.mxu0 %vm69_vm0, %v1116_v1  ;;  %v1133_v4 = vld [vmem:[%s1351_s0 + $0x20] sm:$0xff]  ;;  %925 = vmatpush3.msra.mxu0 %v61_v0  ;;  %v210_v7 = vld [vmem:[%s1352_s4 + $0x18] sm:$0xff]  ;;  %v209_v11 = vld [vmem:[%s1352_s4 + $0x10] sm:$0xff] }
   0x4   :  { %927 = vmatmul.mubr.msk.f32.vlgmr.msra.gmra.mxu0 %vm69_vm0, %v1121_v2  ;;  %1007 = vmatpush3.msra.mxu1 %v61_v0  ;;  %v1155_v8 = vld [vmem:[%s1351_s0 + $0x18] sm:$0xff]  ;;  %v350_v12 = vld [vmem:[%s1353_s6 + $0x10] sm:$0xff]  ;;  %v208_v13 = vld [vmem:[%s1352_s4 + $0x8] sm:$0xff] }
   0x5   :  { %929 = vmatprep.mubr.msk.f32.mxu0 %vm69_vm0, %v1128_v3  ;;  %932 = vmatprep.mubr.msk.f32.mxu1 %vm69_vm0, %v1133_v4  ;;  %v1166_v9 = vld [vmem:[%s1351_s0 + $0x38] sm:$0xff]  ;;  %v349_v14 = vld [vmem:[%s1353_s6 + $0x8] sm:$0xff]  ;;  %v207_v15 = vld [vmem:[%s1352_s4] sm:$0xff] }
   0x6   :  { %933 = vmatmul.mubr.msk.f32.vlgmr.msra.gmra.mxu1 %vm69_vm0, %v1138_v5  ;;  %938 = vmatprep.subr.mxu1 %v210_v7  ;;  %v351_v10 = vld [vmem:[%s1353_s6 + $0x18] sm:$0xff]  ;;  %v348_v16 = vld [vmem:[%s1353_s6] sm:$0xff] }
   0x7   :  { %935 = vmatprep.mubr.msk.f32.mxu1 %vm69_vm0, %v1145_v6  ;;  %939 = vmatpush3.msra.mxu1 %v210_v7  ;;  %v828_v17 = vld [vmem:[%s1354_s3] ss:$0 sm:$0xff] }
   0x8   :  { %930 = vmatmul.mubr.msk.f32.gmra.mxu0 %vm69_vm0, %v1155_v8  ;;  %958 = vmatprep.subr.mxu0 %v351_v10  ;;  %v560_v42 = vld [vmem:[%s1355_s8] sm:$0xff] }
   0x9   :  { %959 = vmatpush3.msra.mxu0 %v351_v10  ;;  %940 = vmatprep.subr.mxu1 %v209_v11  ;;  %v561_v43 = vld [vmem:[%s1356_s9] sm:$0xff] }
   0xa   :  { %936 = vmatmul.mubr.msk.f32.gmra.mxu1 %vm69_vm0, %v1166_v9  ;;  %960 = vmatprep.subr.mxu0 %v350_v12  ;;  %v837_v45 = vld [vmem:[%s1358_s5] ss:$0 sm:$0xff] }
   0xb   :  { %941 = vmatpush3.msra.mxu1 %v209_v11  ;;  %961 = vmatpush3.msra.mxu0 %v350_v12 }
   0xc   :  { %942 = vmatprep.subr.mxu1 %v208_v13  ;;  %962 = vmatprep.subr.mxu0 %v349_v14 }
   0xd   :  { %943 = vmatpush3.msra.mxu1 %v208_v13  ;;  %963 = vmatpush3.msra.mxu0 %v349_v14 }
   0xe   :  { %944 = vmatprep.subr.mxu1 %v207_v15  ;;  %964 = vmatprep.subr.mxu0 %v348_v16 }
   0xf   :  { %945 = vmatpush3.msra.mxu1 %v207_v15  ;;  %965 = vmatpush3.msra.mxu0 %v348_v16 }
  0x10   :  { %992 = vmatprep.subr.mxu0 %v560_v42  ;;  %978 = vmatprep.subr.mxu1 %v561_v43 }
  0xc4   :  { %v928_v18 = vpop.f32.mrf.mxu0 }
  0xc5   :  { %v166_v19 = vadd.f32 %v928_v18, %v828_v17 }
  0xc6   :  { %v160_v20 = vpop.f32.mrf.mxu0  ;;  %v934_v21 = vpop.f32.mrf.mxu1 }
  0xc7   :  { %v161_v22 = vadd.f32 %v828_v17, %v160_v20  ;;  %v200_v27 = vmax.f32 %v166_v19, 0.0  ;;  %v186_v37 = vadd.f32 %v934_v21, %v828_v17 }
  0xc8   :  { %v931_v23 = vpop.f32.mrf.mxu0  ;;  %v180_v24 = vpop.f32.mrf.mxu1 }
  0xc9   :  { %v199_v25 = vmax.f32 %v161_v22, 0.0  ;;  %v181_v26 = vadd.f32 %v828_v17, %v180_v24  ;;  %v176_v28 = vadd.f32 %v931_v23, %v828_v17  ;;  %v204_v39 = vmax.f32 %v186_v37, 0.0  ;;  %v846_v37 = vld [vmem:[%s1360_s7] ss:$0 sm:$0xff] }
  0xca   :  { %v170_v29 = vpop.f32.mrf.mxu0  ;;  %v937_v30 = vpop.f32.mrf.mxu1 }
  0xcb   :  { %v171_v31 = vadd.f32 %v828_v17, %v170_v29  ;;  %946 = vmatprep.mubr.msk.f32.mxu1 %vm218_vm1, %v199_v25  ;;  %966 = vmatprep.mubr.msk.f32.mxu0 %vm218_vm1, %v199_v25  ;;  %v203_v34 = vmax.f32 %v181_v26, 0.0  ;;  %v202_v36 = vmax.f32 %v176_v28, 0.0  ;;  %v196_v40 = vadd.f32 %v937_v30, %v828_v17 }
  0xcc   :  { %947 = vmatmul.mubr.msk.f32.vlgmr.msra.gmra.mxu1 %vm218_vm1, %v200_v27  ;;  %967 = vmatmul.mubr.msk.f32.vlgmr.msra.gmra.mxu0 %vm218_vm1, %v200_v27  ;;  %v190_v32 = vpop.f32.mrf.mxu1 }
  0xcd   :  { %v201_v33 = vmax.f32 %v171_v31, 0.0  ;;  %v191_v35 = vadd.f32 %v828_v17, %v190_v32  ;;  %v206_v41 = vmax.f32 %v196_v40, 0.0  ;;  %993 = vmatpush3.msra.mxu0 %v560_v42  ;;  %979 = vmatpush3.msra.mxu1 %v561_v43  ;;  %v54_v32 = vld [vmem:[%s1359_s1 + $0x8] sm:$0xff]  ;;  %v56_v43 = vld [vmem:[%s1359_s1 + $0x18] sm:$0xff] }
  0xcf   :  { %949 = vmatprep.mubr.msk.f32.mxu1 %vm218_vm1, %v201_v33  ;;  %969 = vmatprep.mubr.msk.f32.mxu0 %vm218_vm1, %v201_v33  ;;  %v205_v38 = vmax.f32 %v191_v35, 0.0  ;;  %v53_v35 = vld [vmem:[%s1359_s1] sm:$0xff] }
  0xd0   :  { %950 = vmatmul.mubr.msk.f32.gmra.mxu1 %vm218_vm1, %v202_v36  ;;  %970 = vmatmul.mubr.msk.f32.gmra.mxu0 %vm218_vm1, %v202_v36 }
  0xd1   :  { %952 = vmatprep.mubr.msk.f32.mxu1 %vm218_vm1, %v203_v34  ;;  %972 = vmatprep.mubr.msk.f32.mxu0 %vm218_vm1, %v203_v34 }
  0xd4   :  { %953 = vmatmul.mubr.msk.f32.gmra.mxu1 %vm218_vm1, %v204_v39  ;;  %973 = vmatmul.mubr.msk.f32.gmra.mxu0 %vm218_vm1, %v204_v39 }
  0xd5   :  { %955 = vmatprep.mubr.msk.f32.mxu1 %vm218_vm1, %v205_v38  ;;  %975 = vmatprep.mubr.msk.f32.mxu0 %vm218_vm1, %v205_v38 }
  0xd8   :  { %956 = vmatmul.mubr.msk.f32.gmra.mxu1 %vm218_vm1, %v206_v41  ;;  %976 = vmatmul.mubr.msk.f32.gmra.mxu0 %vm218_vm1, %v206_v41 }
  0xd9   :  { %994 = vmatprep.mubr.msk.f32.mxu0 %vm69_vm0, %v1116_v1 }
  0xdc   :  { %995 = vmatmul.mubr.msk.f32.vlgmr.msra.gmra.mxu0 %vm69_vm0, %v1121_v2 }
  0xdd   :  { %997 = vmatprep.mubr.msk.f32.mxu0 %vm69_vm0, %v1128_v3 }
  0xe0   :  { %998 = vmatmul.mubr.msk.f32.gmra.mxu0 %vm69_vm0, %v1155_v8 }
  0xe1   :  { %1000 = vmatprep.mubr.msk.f32.mxu0 %vm69_vm0, %v1133_v4 }
  0xe4   :  { %1001 = vmatmul.mubr.msk.f32.gmra.mxu0 %vm69_vm0, %v1138_v5 }
  0xe5   :  { %1003 = vmatprep.mubr.msk.f32.mxu0 %vm69_vm0, %v1145_v6 }
  0xe8   :  { %1004 = vmatmul.mubr.msk.f32.gmra.mxu0 %vm69_vm0, %v1166_v9 }
 0x18c   :  { %v948_v46 = vpop.f32.mrf.mxu1  ;;  %v968_v1 = vpop.f32.mrf.mxu0 }
 0x18d   :  { %v315_v47 = vadd.f32 %v948_v46, %v837_v45  ;;  %v55_v46 = vld [vmem:[%s1359_s1 + $0x10] sm:$0xff] }
 0x18e   :  { %v309_v48 = vpop.f32.mrf.mxu1  ;;  %v425_v9 = vpop.f32.mrf.mxu0 }
 0x18f   :  { %1008 = vtanh.f32 %v315_v47  ;;  %v310_v49 = vadd.f32 %v837_v45, %v309_v48  ;;  %v426_v41 = vadd.f32 %v846_v37, %v425_v9 }
 0x190   :  { %v951_v50 = vpop.f32.mrf.mxu1  ;;  %v971_v18 = vpop.f32.mrf.mxu0 }
 0x191   :  { %1010 = vtanh.f32 %v310_v49  ;;  %v325_v51 = vadd.f32 %v951_v50, %v837_v45 }
 0x192   :  { %v319_v52 = vpop.f32.mrf.mxu1  ;;  %v435_v27 = vpop.f32.mrf.mxu0 }
 0x193   :  { %1012 = vtanh.f32 %v325_v51  ;;  %v320_v53 = vadd.f32 %v837_v45, %v319_v52  ;;  %v436_v52 = vadd.f32 %v846_v37, %v435_v27 }
 0x194   :  { %v954_v54 = vpop.f32.mrf.mxu1  ;;  %v974_v36 = vpop.f32.mrf.mxu0 }
 0x195   :  { %1014 = vtanh.f32 %v320_v53  ;;  %v335_v55 = vadd.f32 %v954_v54, %v837_v45  ;;  %v58_v54 = vld [vmem:[%s1359_s1 + $0x28] sm:$0xff] }
 0x196   :  { %v329_v56 = vpop.f32.mrf.mxu1  ;;  %v445_v47 = vpop.f32.mrf.mxu0 }
 0x197   :  { %1016 = vtanh.f32 %v335_v55  ;;  %v330_v57 = vadd.f32 %v837_v45, %v329_v56  ;;  %v441_v56 = vadd.f32 %v971_v18, %v846_v37 }
 0x198   :  { %v957_v58 = vpop.f32.mrf.mxu1 }
 0x199   :  { %1018 = vtanh.f32 %v330_v57  ;;  %v345_v59 = vadd.f32 %v957_v58, %v837_v45  ;;  %v57_v57 = vld [vmem:[%s1359_s1 + $0x20] sm:$0xff]  ;;  %v977_v58 = vpop.f32.mrf.mxu0 }
 0x19a   :  { %v339_v60 = vpop.f32.mrf.mxu1 }
 0x19b   :  { %1020 = vtanh.f32 %v345_v59  ;;  %v340_v61 = vadd.f32 %v837_v45, %v339_v60  ;;  %v431_v45 = vadd.f32 %v968_v1, %v846_v37  ;;  %v60_v1 = vld [vmem:[%s1359_s1 + $0x38] sm:$0xff] }
 0x19c   :  { %v1009_v62 = vpop.eup %1008 }
 0x19d   :  { %1022 = vtanh.f32 %v340_v61  ;;  %v473_v63 = vmul.f32 2.0, %v1009_v62 }
 0x19e   :  { %v1011_v0 = vpop.eup %1010 }
 0x19f   :  { %v472_v2 = vmul.f32 2.0, %v1011_v0  ;;  %v515_v3 = vsel %vm69_vm0, %v473_v63, 0.0  ;;  %v482_v4 = vmul.f32 1.442695, %v473_v63  ;;  %v446_v63 = vadd.f32 %v846_v37, %v445_v47 }
 0x1a0   :  { %v1013_v5 = vpop.eup %1012  ;;  %516 = vadd.xlane.f32.xlu0 %v515_v3  ;;  %v451_v3 = vadd.f32 %v974_v36, %v846_v37 }
 0x1a1   :  { %v480_v6 = vmul.f32 1.442695, %v472_v2  ;;  %1024 = vpow2.f32 %v482_v4  ;;  %v475_v7 = vmul.f32 2.0, %v1013_v5  ;;  %v512_v10 = vsel %vm69_vm0, %v472_v2, 0.0  ;;  %v59_v4 = vld [vmem:[%s1359_s1 + $0x30] sm:$0xff]  ;;  %v455_v5 = vpop.f32.mrf.mxu0 }
 0x1a2   :  { %v1015_v8 = vpop.eup %1014 }
 0x1a3   :  { %1026 = vpow2.f32 %v480_v6  ;;  %v474_v11 = vmul.f32 2.0, %v1015_v8  ;;  %v521_v12 = vsel %vm69_vm0, %v475_v7, 0.0  ;;  %v486_v13 = vmul.f32 1.442695, %v475_v7 }
 0x1a4   :  { %v1017_v14 = vpop.eup %1016  ;;  %522 = vadd.xlane.f32.xlu1 %v521_v12  ;;  %513 = vadd.xlane.f32.xlu0 %v512_v10  ;;  %v456_v10 = vadd.f32 %v846_v37, %v455_v5  ;;  %v461_v12 = vadd.f32 %v977_v58, %v846_v37  ;;  %v872_v37 = vld [vmem:[%s1362_s10] ss:$0 sm:$0xff] }
 0x1a5   :  { %v484_v15 = vmul.f32 1.442695, %v474_v11  ;;  %v477_v16 = vmul.f32 2.0, %v1017_v14  ;;  %1028 = vpow2.f32 %v486_v13  ;;  %v518_v21 = vsel %vm69_vm0, %v474_v11, 0.0 }
 0x1a6   :  { %v1019_v17 = vpop.eup %1018 }
 0x1a7   :  { %1030 = vpow2.f32 %v484_v15  ;;  %v490_v19 = vmul.f32 1.442695, %v477_v16  ;;  %v476_v20 = vmul.f32 2.0, %v1019_v17  ;;  %v527_v30 = vsel %vm69_vm0, %v477_v16, 0.0  ;;  %v855_v15 = vld [vmem:[#allocation2] ss:$0 sm:$0xff] }
 0x1a8   :  { %v1021_v22 = vpop.eup %1020  ;;  %519 = vadd.xlane.f32.xlu1 %v518_v21 }
 0x1a9   :  { %1032 = vpow2.f32 %v490_v19  ;;  %v488_v23 = vmul.f32 1.442695, %v476_v20  ;;  %v479_v24 = vmul.f32 2.0, %v1021_v22  ;;  %v524_v25 = vsel %vm69_vm0, %v476_v20, 0.0 }
 0x1aa   :  { %v1023_v26 = vpop.eup %1022  ;;  %525 = vadd.xlane.f32.xlu0 %v524_v25 }
 0x1ab   :  { %1034 = vpow2.f32 %v488_v23  ;;  %v494_v28 = vmul.f32 1.442695, %v479_v24  ;;  %v478_v29 = vmul.f32 2.0, %v1023_v26  ;;  %v533_v38 = vsel %vm69_vm0, %v479_v24, 0.0 }
 0x1ac   :  { %528 = vadd.xlane.f32.xlu1 %v527_v30 }
 0x1ad   :  { %1036 = vpow2.f32 %v494_v28  ;;  %v492_v31 = vmul.f32 1.442695, %v478_v29  ;;  %v530_v33 = vsel %vm69_vm0, %v478_v29, 0.0 }
 0x1ae   :  { %v1025_v34 = vpop.eup %1024  ;;  %531 = vadd.xlane.f32.xlu0 %v530_v33 }
 0x1af   :  { %1038 = vpow2.f32 %v492_v31  ;;  %v497_v40 = vmul.f32 %v1025_v34, %v54_v32  ;;  %v996_v32 = vpop.f32.mrf.mxu0 }
 0x1b0   :  { %v1027_v39 = vpop.eup %1026  ;;  %534 = vadd.xlane.f32.xlu1 %v533_v38 }
 0x1b1   :  { %v496_v42 = vmul.f32 %v1027_v39, %v53_v35  ;;  %v505_v50 = vadd.f32 %v497_v40, %v431_v45  ;;  %v757_v33 = vpop.f32.mrf.mxu0 }
 0x1b2   :  { %v1029_v44 = vpop.eup %1028 }
 0x1b3   :  { %v504_v48 = vadd.f32 %v496_v42, %v426_v41  ;;  %v499_v51 = vmul.f32 %v1029_v44, %v56_v43  ;;  %v999_v34 = vpop.f32.mrf.mxu0 }
 0x1b4   :  { %v1031_v49 = vpop.eup %1030 }
 0x1b5   :  { %v498_v53 = vmul.f32 %v1031_v49, %v55_v46  ;;  %980 = vmatprep.mubr.msk.f32.mxu1 %vm69_vm0, %v504_v48  ;;  %v507_v62 = vadd.f32 %v499_v51, %v441_v56  ;;  %v767_v35 = vpop.f32.mrf.mxu0 }
 0x1b6   :  { %v1033_v55 = vpop.eup %1032  ;;  %981 = vmatmul.mubr.msk.f32.vlgmr.msra.gmra.mxu1 %vm69_vm0, %v505_v50 }
 0x1b7   :  { %v506_v59 = vadd.f32 %v498_v53, %v436_v52  ;;  %v501_v61 = vmul.f32 %v1033_v55, %v58_v54  ;;  %v1002_v40 = vpop.f32.mrf.mxu0 }
 0x1b8   :  { %v1035_v60 = vpop.eup %1034 }
 0x1b9   :  { %v500_v0 = vmul.f32 %v1035_v60, %v57_v57  ;;  %983 = vmatprep.mubr.msk.f32.mxu1 %vm69_vm0, %v506_v59  ;;  %v509_v8 = vadd.f32 %v501_v61, %v451_v3  ;;  %v777_v47 = vpop.f32.mrf.mxu0 }
 0x1ba   :  { %v1037_v2 = vpop.eup %1036  ;;  %984 = vmatmul.mubr.msk.f32.gmra.mxu1 %vm69_vm0, %v507_v62 }
 0x1bb   :  { %v508_v6 = vadd.f32 %v500_v0, %v446_v63  ;;  %v503_v9 = vmul.f32 %v1037_v2, %v60_v1  ;;  %v1005_v54 = vpop.f32.mrf.mxu0 }
 0x1bc   :  { %v1039_v7 = vpop.eup %1038 }
 0x1bd   :  { %v502_v11 = vmul.f32 %v1039_v7, %v59_v4  ;;  %986 = vmatprep.mubr.msk.f32.mxu1 %vm69_vm0, %v508_v6  ;;  %v511_v14 = vadd.f32 %v503_v9, %v461_v12  ;;  %v787_v60 = vpop.f32.mrf.mxu0 }
 0x1be   :  { %987 = vmatmul.mubr.msk.f32.gmra.mxu1 %vm69_vm0, %v509_v8 }
 0x1bf   :  { %v510_v13 = vadd.f32 %v502_v11, %v456_v10 }
 0x1c1   :  { %989 = vmatprep.mubr.msk.f32.mxu1 %vm69_vm0, %v510_v13 }
 0x1c2   :  { %990 = vmatmul.mubr.msk.f32.gmra.mxu1 %vm69_vm0, %v511_v14 }
 0x229   :  { %v517_v16 = vpop.xlane.xlu0 %516 }
 0x22a   :  { %v544_v17 = vadd.f32 %v855_v15, %v517_v16 }
 0x22c   :  { %553 = vst.msk [vmem:[%s1361_s13 + $0x8] sm:$0xff] %vm551_vm2, %v544_v17 }
 0x22d   :  { %v523_v18 = vpop.xlane.xlu1 %522  ;;  %v514_v19 = vpop.xlane.xlu0 %513 }
 0x22e   :  { %v546_v20 = vadd.f32 %v855_v15, %v523_v18  ;;  %v543_v21 = vadd.f32 %v855_v15, %v514_v19 }
 0x230   :  { %555 = vst.msk [vmem:[%s1361_s13 + $0x18] sm:$0xff] %vm551_vm2, %v546_v20  ;;  %552 = vst.msk [vmem:[%s1361_s13] sm:$0xff] %vm551_vm2, %v543_v21 }
 0x231   :  { %v520_v22 = vpop.xlane.xlu1 %519 }
 0x232   :  { %v545_v23 = vadd.f32 %v855_v15, %v520_v22 }
 0x233   :  { %v526_v24 = vpop.xlane.xlu0 %525 }
 0x234   :  { %554 = vst.msk [vmem:[%s1361_s13 + $0x10] sm:$0xff] %vm551_vm2, %v545_v23  ;;  %v547_v25 = vadd.f32 %v855_v15, %v526_v24 }
 0x235   :  { %v529_v26 = vpop.xlane.xlu1 %528 }
 0x236   :  { %556 = vst.msk [vmem:[%s1361_s13 + $0x20] sm:$0xff] %vm551_vm2, %v547_v25  ;;  %v548_v27 = vadd.f32 %v855_v15, %v529_v26 }
 0x237   :  { %v532_v28 = vpop.xlane.xlu0 %531 }
 0x238   :  { %557 = vst.msk [vmem:[%s1361_s13 + $0x28] sm:$0xff] %vm551_vm2, %v548_v27  ;;  %v549_v29 = vadd.f32 %v855_v15, %v532_v28 }
 0x239   :  { %v535_v30 = vpop.xlane.xlu1 %534 }
 0x23a   :  { %558 = vst.msk [vmem:[%s1361_s13 + $0x30] sm:$0xff] %vm551_vm2, %v549_v29  ;;  %v550_v31 = vadd.f32 %v855_v15, %v535_v30 }
 0x23c   :  { %559 = vst.msk [vmem:[%s1361_s13 + $0x38] sm:$0xff] %vm551_vm2, %v550_v31 }
 0x276   :  { %v982_v36 = vpop.f32.mrf.mxu1 }
 0x277   :  { %v763_v38 = vadd.f32 %v996_v32, %v982_v36 }
 0x278   :  { %v652_v39 = vpop.f32.mrf.mxu1 }
 0x279   :  { %v804_v41 = vadd.f32 %v872_v37, %v763_v38  ;;  %v758_v42 = vadd.f32 %v757_v33, %v652_v39 }
 0x27a   :  { %v985_v43 = vpop.f32.mrf.mxu1 }
 0x27b   :  { %813 = vst.msk [vmem:[%s1363_s12 + $0x8] sm:$0xff] %vm811_vm3, %v804_v41  ;;  %v803_v44 = vadd.f32 %v872_v37, %v758_v42  ;;  %v773_v45 = vadd.f32 %v999_v34, %v985_v43 }
 0x27c   :  { %v662_v46 = vpop.f32.mrf.mxu1 }
 0x27d   :  { %812 = vst.msk [vmem:[%s1363_s12] sm:$0xff] %vm811_vm3, %v803_v44  ;;  %v806_v48 = vadd.f32 %v872_v37, %v773_v45  ;;  %v768_v49 = vadd.f32 %v767_v35, %v662_v46 }
 0x27e   :  { %v988_v50 = vpop.f32.mrf.mxu1 }
 0x27f   :  { %815 = vst.msk [vmem:[%s1363_s12 + $0x18] sm:$0xff] %vm811_vm3, %v806_v48  ;;  %v805_v51 = vadd.f32 %v872_v37, %v768_v49  ;;  %v783_v52 = vadd.f32 %v1002_v40, %v988_v50 }
 0x280   :  { %v672_v53 = vpop.f32.mrf.mxu1 }
 0x281   :  { %814 = vst.msk [vmem:[%s1363_s12 + $0x10] sm:$0xff] %vm811_vm3, %v805_v51  ;;  %v808_v55 = vadd.f32 %v872_v37, %v783_v52  ;;  %v778_v56 = vadd.f32 %v777_v47, %v672_v53 }
 0x282   :  { %v991_v57 = vpop.f32.mrf.mxu1 }
 0x283   :  { %817 = vst.msk [vmem:[%s1363_s12 + $0x28] sm:$0xff] %vm811_vm3, %v808_v55  ;;  %v807_v58 = vadd.f32 %v872_v37, %v778_v56  ;;  %v793_v59 = vadd.f32 %v1005_v54, %v991_v57 }
 0x284   :  { %v682_v61 = vpop.f32.mrf.mxu1 }
 0x285   :  { %816 = vst.msk [vmem:[%s1363_s12 + $0x20] sm:$0xff] %vm811_vm3, %v807_v58  ;;  %v810_v62 = vadd.f32 %v872_v37, %v793_v59  ;;  %v788_v63 = vadd.f32 %v787_v60, %v682_v61 }
 0x287   :  { %819 = vst.msk [vmem:[%s1363_s12 + $0x38] sm:$0xff] %vm811_vm3, %v810_v62  ;;  %v809_v0 = vadd.f32 %v872_v37, %v788_v63 }
 0x289   :  { %818 = vst.msk [vmem:[%s1363_s12 + $0x30] sm:$0xff] %vm811_vm3, %v809_v0 }

</bundles_post_ra>
